<compile_context>
chip_gen: v7x
topology: tpu7x:2x2x1
jax: 0.10.0
libtpu: 0.0.40
codegen_flags: <defaults>
</compile_context>

<pallas_src>
import functools
import math

import jax
import jax.numpy as jnp
from jax.experimental import pallas as pl
from jax.experimental.pallas import tpu as pltpu

LANE = 128     # lane width (last dim of a vreg)
SUBLANE = 8    # sublane width
MAX_TB = 256   # batch rows per grid step (bigger tiles amortize per-step overhead)


def _round_up(x, m):
    return (x + m - 1) // m * m


def _fused_mlp_kernel(*refs, activations, out_dim):
    """h = x; for each layer: h = act(h @ W_t + b); o = h[:, :out_dim].

    refs layout: (x_ref, w1_ref, b1_ref, ..., wN_ref, bN_ref, o_ref)
      x_ref : (TB, D0)            VMEM, f32 (D0 unpadded; Mosaic mask-pads)
      wi_ref: (Di_in, Di_out_pad) VMEM, bf16 (pre-transposed, zero-padded cols)
      bi_ref: (1, Di_out_pad)     VMEM, f32  (zero-padded)
      o_ref : (TB, out_dim)       VMEM
    Intermediates stay in VMEM/vregs; nothing round-trips HBM between layers.
    """
    x_ref = refs[0]
    o_ref = refs[-1]
    wb_refs = refs[1:-1]

    h = x_ref[...].astype(jnp.float32)
    for i, act in enumerate(activations):
        w = wb_refs[2 * i][...]          # bf16 -> MXU-native
        b = wb_refs[2 * i + 1][...]      # f32
        h = jnp.dot(h.astype(w.dtype), w, preferred_element_type=jnp.float32) + b
        if act == "relu":
            h = jnp.maximum(h, 0.0)      # VPU
        elif act == "tanh":
            h = jnp.tanh(h)              # EUP
        elif act == "none":
            pass
        else:
            raise ValueError(f"unknown activation {act!r}")
    o_ref[...] = h[:, :out_dim].astype(o_ref.dtype)


def init_simple_mlp_params(key, dims_list):
    """PyTorch nn.Linear default init: U(-1/sqrt(fan_in), 1/sqrt(fan_in)) for
    weight (out, in) and bias (out,). Returned in PyTorch layout (for the ref)."""
    params = []
    for no in range(len(dims_list) - 1):
        din, dout = dims_list[no], dims_list[no + 1]
        key, kw, kb = jax.random.split(key, 3)
        bound = 1.0 / math.sqrt(din)
        w = jax.random.uniform(kw, (dout, din), jnp.float32, -bound, bound)
        b = jax.random.uniform(kb, (dout,), jnp.float32, -bound, bound)
        params.append((w, b))
    return params


def pack_mlp_params(params, activations=None, weight_dtype=jnp.bfloat16):
    """One-time packing: transpose weights to (Din, Dout), zero-pad every layer's
    OUTPUT dim to a multiple of 128 (lane-dense intermediates), cast weights to
    bf16, reshape biases to (1, Dout_pad) in f32. The first layer's input dim is
    left unpadded so raw x can be fed with no HLO-side padding."""
    n = len(params)
    if activations is None:
        # SimpleMLP default: ReLU after every layer except the last, Tanh last.
        activations = tuple("relu" if i < n - 1 else "tanh" for i in range(n))
    in_dim = params[0][0].shape[1]
    weights, biases = [], []
    prev_dim = in_dim                      # layer-0 input dim stays unpadded
    for w, b in params:
        dout, din = w.shape
        dout_pad = _round_up(dout, LANE)
        w_t = jnp.zeros((prev_dim, dout_pad), jnp.float32).at[:din, :dout].set(w.T)
        b_p = jnp.zeros((1, dout_pad), jnp.float32).at[0, :dout].set(b)
        weights.append(w_t.astype(weight_dtype))
        biases.append(b_p)
        prev_dim = dout_pad
    return {
        "weights": tuple(weights),
        "biases": tuple(biases),
        "activations": tuple(activations),
        "in_dim": in_dim,
        "out_dim": params[-1][0].shape[0],
    }


@functools.partial(
    jax.jit, static_argnames=("activations", "out_dim", "single_buffer_weights"))
def _forward_jit(x, weights, biases, *, activations, out_dim, single_buffer_weights):
    B, Din = x.shape
    assert Din == weights[0].shape[0]

    # Batch tiling: one full-array block for small batches (bypasses the (8,128)
    # divisibility rule); MAX_TB-row tiles otherwise. B > MAX_TB automatically
    # gives >= 2 "parallel" grid steps, so both v7x TensorCores get work.
    if B <= MAX_TB:
        tb, nb = B, 1
    else:
        tb = MAX_TB                      # multiple of 8 -> valid sublane tiling
        nb = pl.cdiv(B, tb)              # last block may be partial; OOB rows are dropped

    _const_map = lambda i: (0, 0)        # grid-invariant operands
    wb_mode = pl.Buffered(1) if single_buffer_weights else None

    in_specs = [pl.BlockSpec((tb, Din), lambda i: (i, 0))]
    args = [x]
    for w, b in zip(weights, biases):
        if wb_mode is not None:
            in_specs.append(pl.BlockSpec(w.shape, _const_map, pipeline_mode=wb_mode))
            in_specs.append(pl.BlockSpec(b.shape, _const_map, pipeline_mode=wb_mode))
        else:
            in_specs.append(pl.BlockSpec(w.shape, _const_map))
            in_specs.append(pl.BlockSpec(b.shape, _const_map))
        args.append(w)
        args.append(b)
    out_specs = pl.BlockSpec((tb, out_dim), lambda i: (i, 0))

    kernel = functools.partial(
        _fused_mlp_kernel, activations=activations, out_dim=out_dim)

    # Explicit VMEM budget (matters on v7x: 64 MiB physical / 32 MiB default
    # scoped, and on v5e: 16 MiB default scoped).  Weights are resident once
    # (Buffered(1)) or twice; x/out tiles are double-buffered by the pipeline.
    wb_bytes = sum(a.size * a.dtype.itemsize for a in (*weights, *biases))
    wb_bytes *= 1 if single_buffer_weights else 2
    tile_bytes = 2 * (tb * Din + tb * out_dim) * x.dtype.itemsize
    vmem_limit = min(max(4 * (wb_bytes + tile_bytes) + (8 << 20), 16 << 20), 64 << 20)
    # TODO(synk): if wb_bytes ever approaches the v7x budget (~40-48 MiB), switch
    # to per-layer weight pipelining (pltpu.emit_pipeline) instead of all-resident.

    return pl.pallas_call(
        kernel,
        out_shape=jax.ShapeDtypeStruct((B, out_dim), x.dtype),
        grid=(nb,),
        in_specs=in_specs,
        out_specs=out_specs,
        compiler_params=pltpu.CompilerParams(
            dimension_semantics=("parallel",),   # batch tiles are independent
            vmem_limit_bytes=vmem_limit,
        ),
    )(*args)


_SINGLE_BUFFER_OK = True  # flipped to False if this build rejects pl.Buffered(1)


def simple_mlp_forward(x, packed):
    """Single fused, jitted pallas_call; no HLO-side pad/slice around it."""
    global _SINGLE_BUFFER_OK
    kwargs = dict(activations=packed["activations"], out_dim=packed["out_dim"])
    if _SINGLE_BUFFER_OK:
        try:
            return _forward_jit(x, packed["weights"], packed["biases"],
                                single_buffer_weights=True, **kwargs)
        except Exception:
            _SINGLE_BUFFER_OK = False
    return _forward_jit(x, packed["weights"], packed["biases"],
                        single_buffer_weights=False, **kwargs)


def simple_mlp_reference(x, params):
    """Pure-JAX f32 reference matching SimpleMLP.forward with default activations."""
    n_layers = len(params)
    tmp = x
    for no, (w, b) in enumerate(params):
        tmp = tmp @ w.T + b
        tmp = jnp.tanh(tmp) if no == n_layers - 1 else jnp.maximum(tmp, 0.0)
    return tmp


if __name__ == "__main__":
    key = jax.random.PRNGKey(0)
    dims_list = [32, 64, 64, 16]   # dimsList for SimpleMLP
    batch = 8

    kx, kp = jax.random.split(key)
    x = jax.random.normal(kx, (batch, dims_list[0]), jnp.float32)
    params = init_simple_mlp_params(kp, dims_list)
    packed = pack_mlp_params(params)   # one-time transpose + pad + bf16 cast

    out = simple_mlp_forward(x, packed)
    out = jax.block_until_ready(out)

    ref = simple_mlp_reference(x, params)
    assert out.shape == (batch, dims_list[-1])
    # bf16 MXU inputs with f32 accumulation -> loosened tolerance vs f32 reference.
    assert jnp.allclose(out, ref, atol=2e-2, rtol=2e-2), "mismatch vs reference"

    print("KERNEL_OK")
</pallas_src>

<mosaic_0001>
module attributes {stable_mosaic.version = 11 : i64} {
  func.func @_fused_mlp_kernel(%arg0: i32, %arg1: memref<8x32xf32, #tpu.memory_space<vmem>>, %arg2: memref<32x128xbf16, #tpu.memory_space<vmem>>, %arg3: memref<1x128xf32, #tpu.memory_space<vmem>>, %arg4: memref<128x128xbf16, #tpu.memory_space<vmem>>, %arg5: memref<1x128xf32, #tpu.memory_space<vmem>>, %arg6: memref<128x128xbf16, #tpu.memory_space<vmem>>, %arg7: memref<1x128xf32, #tpu.memory_space<vmem>>, %arg8: memref<8x16xf32, #tpu.memory_space<vmem>>) attributes {dimension_semantics = [#tpu.dimension_semantics<parallel>], iteration_bounds = array<i64: 1>, scalar_prefetch = 0 : i64, scratch_operands = 0 : i64, tpu.core_type = #tpu.core_type<tc>, window_params = [{transform_indices = @transform_0, window_bounds = array<i64: 8, 32>}, {pipeline_mode = #tpu.pipeline_mode<synchronous>, transform_indices = @transform_1, window_bounds = array<i64: 32, 128>}, {pipeline_mode = #tpu.pipeline_mode<synchronous>, transform_indices = @transform_2, window_bounds = array<i64: 1, 128>}, {pipeline_mode = #tpu.pipeline_mode<synchronous>, transform_indices = @transform_3, window_bounds = array<i64: 128, 128>}, {pipeline_mode = #tpu.pipeline_mode<synchronous>, transform_indices = @transform_4, window_bounds = array<i64: 1, 128>}, {pipeline_mode = #tpu.pipeline_mode<synchronous>, transform_indices = @transform_5, window_bounds = array<i64: 128, 128>}, {pipeline_mode = #tpu.pipeline_mode<synchronous>, transform_indices = @transform_6, window_bounds = array<i64: 1, 128>}, {transform_indices = @transform_7, window_bounds = array<i64: 8, 16>}]} {
    %c0 = arith.constant 0 : index
    %c0_0 = arith.constant 0 : index
    %0 = vector.load %arg1[%c0, %c0_0] : memref<8x32xf32, #tpu.memory_space<vmem>>, vector<8x32xf32>
    %c0_1 = arith.constant 0 : index
    %c0_2 = arith.constant 0 : index
    %1 = vector.load %arg2[%c0_1, %c0_2] : memref<32x128xbf16, #tpu.memory_space<vmem>>, vector<32x128xbf16>
    %c0_3 = arith.constant 0 : index
    %c0_4 = arith.constant 0 : index
    %2 = vector.load %arg3[%c0_3, %c0_4] : memref<1x128xf32, #tpu.memory_space<vmem>>, vector<1x128xf32>
    %3 = arith.truncf %0 : vector<8x32xf32> to vector<8x32xbf16>
    %cst = arith.constant dense<0.000000e+00> : vector<8x128xf32>
    %4 = tpu.matmul %3, %1, %cst {dimension_numbers = #tpu.dot_dimension_numbers<[1], [0], [0], [1], [0, 0, 1, 1], [], []>} : vector<8x32xbf16>, vector<32x128xbf16>, vector<8x128xf32> -> vector<8x128xf32>
    %5 = vector.broadcast %2 : vector<1x128xf32> to vector<8x128xf32>
    %6 = arith.addf %4, %5 : vector<8x128xf32>
    %cst_5 = arith.constant 0.000000e+00 : f32
    %7 = vector.broadcast %cst_5 : f32 to vector<8x128xf32>
    %8 = arith.maximumf %6, %7 : vector<8x128xf32>
    %c0_6 = arith.constant 0 : index
    %c0_7 = arith.constant 0 : index
    %9 = vector.load %arg4[%c0_6, %c0_7] : memref<128x128xbf16, #tpu.memory_space<vmem>>, vector<128x128xbf16>
    %c0_8 = arith.constant 0 : index
    %c0_9 = arith.constant 0 : index
    %10 = vector.load %arg5[%c0_8, %c0_9] : memref<1x128xf32, #tpu.memory_space<vmem>>, vector<1x128xf32>
    %11 = arith.truncf %8 : vector<8x128xf32> to vector<8x128xbf16>
    %cst_10 = arith.constant dense<0.000000e+00> : vector<8x128xf32>
    %12 = tpu.matmul %11, %9, %cst_10 {dimension_numbers = #tpu.dot_dimension_numbers<[1], [0], [0], [1], [0, 0, 1, 1], [], []>} : vector<8x128xbf16>, vector<128x128xbf16>, vector<8x128xf32> -> vector<8x128xf32>
    %13 = vector.broadcast %10 : vector<1x128xf32> to vector<8x128xf32>
    %14 = arith.addf %12, %13 : vector<8x128xf32>
    %cst_11 = arith.constant 0.000000e+00 : f32
    %15 = vector.broadcast %cst_11 : f32 to vector<8x128xf32>
    %16 = arith.maximumf %14, %15 : vector<8x128xf32>
    %c0_12 = arith.constant 0 : index
    %c0_13 = arith.constant 0 : index
    %17 = vector.load %arg6[%c0_12, %c0_13] : memref<128x128xbf16, #tpu.memory_space<vmem>>, vector<128x128xbf16>
    %c0_14 = arith.constant 0 : index
    %c0_15 = arith.constant 0 : index
    %18 = vector.load %arg7[%c0_14, %c0_15] : memref<1x128xf32, #tpu.memory_space<vmem>>, vector<1x128xf32>
    %19 = arith.truncf %16 : vector<8x128xf32> to vector<8x128xbf16>
    %cst_16 = arith.constant dense<0.000000e+00> : vector<8x128xf32>
    %20 = tpu.matmul %19, %17, %cst_16 {dimension_numbers = #tpu.dot_dimension_numbers<[1], [0], [0], [1], [0, 0, 1, 1], [], []>} : vector<8x128xbf16>, vector<128x128xbf16>, vector<8x128xf32> -> vector<8x128xf32>
    %21 = vector.broadcast %18 : vector<1x128xf32> to vector<8x128xf32>
    %22 = arith.addf %20, %21 : vector<8x128xf32>
    %23 = math.tanh %22 : vector<8x128xf32>
    %24 = vector.extract_strided_slice %23 {offsets = [0, 0], sizes = [8, 16], strides = [1, 1]} : vector<8x128xf32> to vector<8x16xf32>
    %c0_17 = arith.constant 0 : index
    %c0_18 = arith.constant 0 : index
    %25 = vector.load %arg8[%c0_17, %c0_18] : memref<8x16xf32, #tpu.memory_space<vmem>>, vector<8x16xf32>
    tpu.vector_store %arg8[%c0_17, %c0_18], %24 {strides = array<i32>} : memref<8x16xf32, #tpu.memory_space<vmem>>, vector<8x16xf32>,
    return
  }
  func.func @transform_0(%arg0: i32) -> (i32, i32) {
    %c0_i32 = arith.constant 0 : i32
    %c0_i32_0 = arith.constant 0 : i32
    return %arg0, %c0_i32 : i32, i32
  }
  func.func @transform_1(%arg0: i32) -> (i32, i32) {
    %c0_i32 = arith.constant 0 : i32
    %c0_i32_0 = arith.constant 0 : i32
    %c0_i32_1 = arith.constant 0 : i32
    return %c0_i32, %c0_i32_0 : i32, i32
  }
  func.func @transform_2(%arg0: i32) -> (i32, i32) {
    %c0_i32 = arith.constant 0 : i32
    %c0_i32_0 = arith.constant 0 : i32
    %c0_i32_1 = arith.constant 0 : i32
    return %c0_i32, %c0_i32_0 : i32, i32
  }
  func.func @transform_3(%arg0: i32) -> (i32, i32) {
    %c0_i32 = arith.constant 0 : i32
    %c0_i32_0 = arith.constant 0 : i32
    %c0_i32_1 = arith.constant 0 : i32
    return %c0_i32, %c0_i32_0 : i32, i32
  }
  func.func @transform_4(%arg0: i32) -> (i32, i32) {
    %c0_i32 = arith.constant 0 : i32
    %c0_i32_0 = arith.constant 0 : i32
    %c0_i32_1 = arith.constant 0 : i32
    return %c0_i32, %c0_i32_0 : i32, i32
  }
  func.func @transform_5(%arg0: i32) -> (i32, i32) {
    %c0_i32 = arith.constant 0 : i32
    %c0_i32_0 = arith.constant 0 : i32
    %c0_i32_1 = arith.constant 0 : i32
    return %c0_i32, %c0_i32_0 : i32, i32
  }
  func.func @transform_6(%arg0: i32) -> (i32, i32) {
    %c0_i32 = arith.constant 0 : i32
    %c0_i32_0 = arith.constant 0 : i32
    %c0_i32_1 = arith.constant 0 : i32
    return %c0_i32, %c0_i32_0 : i32, i32
  }
  func.func @transform_7(%arg0: i32) -> (i32, i32) {
    %c0_i32 = arith.constant 0 : i32
    %c0_i32_0 = arith.constant 0 : i32
    return %arg0, %c0_i32 : i32, i32
  }
}

module attributes {stable_mosaic.version = 11 : i64} {
  func.func @_fused_mlp_kernel(%arg0: i32, %arg1: memref<8x32xf32, #tpu.memory_space<vmem>>, %arg2: memref<32x128xbf16, #tpu.memory_space<vmem>>, %arg3: memref<1x128xf32, #tpu.memory_space<vmem>>, %arg4: memref<128x128xbf16, #tpu.memory_space<vmem>>, %arg5: memref<1x128xf32, #tpu.memory_space<vmem>>, %arg6: memref<128x128xbf16, #tpu.memory_space<vmem>>, %arg7: memref<1x128xf32, #tpu.memory_space<vmem>>, %arg8: memref<8x16xf32, #tpu.memory_space<vmem>>) attributes {dimension_semantics = [#tpu.dimension_semantics<parallel>], iteration_bounds = array<i64: 1>, scalar_prefetch = 0 : i64, scratch_operands = 0 : i64, tpu.core_type = #tpu.core_type<tc>, window_params = [{transform_indices = @transform_0, window_bounds = array<i64: 8, 32>}, {pipeline_mode = #tpu.pipeline_mode<synchronous>, transform_indices = @transform_1, window_bounds = array<i64: 32, 128>}, {pipeline_mode = #tpu.pipeline_mode<synchronous>, transform_indices = @transform_2, window_bounds = array<i64: 1, 128>}, {pipeline_mode = #tpu.pipeline_mode<synchronous>, transform_indices = @transform_3, window_bounds = array<i64: 128, 128>}, {pipeline_mode = #tpu.pipeline_mode<synchronous>, transform_indices = @transform_4, window_bounds = array<i64: 1, 128>}, {pipeline_mode = #tpu.pipeline_mode<synchronous>, transform_indices = @transform_5, window_bounds = array<i64: 128, 128>}, {pipeline_mode = #tpu.pipeline_mode<synchronous>, transform_indices = @transform_6, window_bounds = array<i64: 1, 128>}, {transform_indices = @transform_7, window_bounds = array<i64: 8, 16>}]} {
    %c0 = arith.constant 0 : index
    %c0_0 = arith.constant 0 : index
    %0 = vector.load %arg1[%c0, %c0_0] : memref<8x32xf32, #tpu.memory_space<vmem>>, vector<8x32xf32>
    %c0_1 = arith.constant 0 : index
    %c0_2 = arith.constant 0 : index
    %1 = vector.load %arg2[%c0_1, %c0_2] : memref<32x128xbf16, #tpu.memory_space<vmem>>, vector<32x128xbf16>
    %c0_3 = arith.constant 0 : index
    %c0_4 = arith.constant 0 : index
    %2 = vector.load %arg3[%c0_3, %c0_4] : memref<1x128xf32, #tpu.memory_space<vmem>>, vector<1x128xf32>
    %3 = arith.truncf %0 : vector<8x32xf32> to vector<8x32xbf16>
    %cst = arith.constant dense<0.000000e+00> : vector<8x128xf32>
    %4 = tpu.matmul %3, %1, %cst {dimension_numbers = #tpu.dot_dimension_numbers<[1], [0], [0], [1], [0, 0, 1, 1], [], []>} : vector<8x32xbf16>, vector<32x128xbf16>, vector<8x128xf32> -> vector<8x128xf32>
    %5 = vector.broadcast %2 : vector<1x128xf32> to vector<8x128xf32>
    %6 = arith.addf %4, %5 : vector<8x128xf32>
    %cst_5 = arith.constant 0.000000e+00 : f32
    %7 = vector.broadcast %cst_5 : f32 to vector<8x128xf32>
    %8 = arith.maximumf %6, %7 : vector<8x128xf32>
    %c0_6 = arith.constant 0 : index
    %c0_7 = arith.constant 0 : index
    %9 = vector.load %arg4[%c0_6, %c0_7] : memref<128x128xbf16, #tpu.memory_space<vmem>>, vector<128x128xbf16>
    %c0_8 = arith.constant 0 : index
    %c0_9 = arith.constant 0 : index
    %10 = vector.load %arg5[%c0_8, %c0_9] : memref<1x128xf32, #tpu.memory_space<vmem>>, vector<1x128xf32>
    %11 = arith.truncf %8 : vector<8x128xf32> to vector<8x128xbf16>
    %cst_10 = arith.constant dense<0.000000e+00> : vector<8x128xf32>
    %12 = tpu.matmul %11, %9, %cst_10 {dimension_numbers = #tpu.dot_dimension_numbers<[1], [0], [0], [1], [0, 0, 1, 1], [], []>} : vector<8x128xbf16>, vector<128x128xbf16>, vector<8x128xf32> -> vector<8x128xf32>
    %13 = vector.broadcast %10 : vector<1x128xf32> to vector<8x128xf32>
    %14 = arith.addf %12, %13 : vector<8x128xf32>
    %cst_11 = arith.constant 0.000000e+00 : f32
    %15 = vector.broadcast %cst_11 : f32 to vector<8x128xf32>
    %16 = arith.maximumf %14, %15 : vector<8x128xf32>
    %c0_12 = arith.constant 0 : index
    %c0_13 = arith.constant 0 : index
    %17 = vector.load %arg6[%c0_12, %c0_13] : memref<128x128xbf16, #tpu.memory_space<vmem>>, vector<128x128xbf16>
    %c0_14 = arith.constant 0 : index
    %c0_15 = arith.constant 0 : index
    %18 = vector.load %arg7[%c0_14, %c0_15] : memref<1x128xf32, #tpu.memory_space<vmem>>, vector<1x128xf32>
    %19 = arith.truncf %16 : vector<8x128xf32> to vector<8x128xbf16>
    %cst_16 = arith.constant dense<0.000000e+00> : vector<8x128xf32>
    %20 = tpu.matmul %19, %17, %cst_16 {dimension_numbers = #tpu.dot_dimension_numbers<[1], [0], [0], [1], [0, 0, 1, 1], [], []>} : vector<8x128xbf16>, vector<128x128xbf16>, vector<8x128xf32> -> vector<8x128xf32>
    %21 = vector.broadcast %18 : vector<1x128xf32> to vector<8x128xf32>
    %22 = arith.addf %20, %21 : vector<8x128xf32>
    %23 = math.tanh %22 : vector<8x128xf32>
    %24 = vector.extract_strided_slice %23 {offsets = [0, 0], sizes = [8, 16], strides = [1, 1]} : vector<8x128xf32> to vector<8x16xf32>
    %c0_17 = arith.constant 0 : index
    %c0_18 = arith.constant 0 : index
    %25 = vector.load %arg8[%c0_17, %c0_18] : memref<8x16xf32, #tpu.memory_space<vmem>>, vector<8x16xf32>
    tpu.vector_store %arg8[%c0_17, %c0_18], %24 {strides = array<i32>} : memref<8x16xf32, #tpu.memory_space<vmem>>, vector<8x16xf32>,
    return
  }
  func.func @transform_0(%arg0: i32) -> (i32, i32) {
    %c0_i32 = arith.constant 0 : i32
    %c0_i32_0 = arith.constant 0 : i32
    return %arg0, %c0_i32 : i32, i32
  }
  func.func @transform_1(%arg0: i32) -> (i32, i32) {
    %c0_i32 = arith.constant 0 : i32
    %c0_i32_0 = arith.constant 0 : i32
    %c0_i32_1 = arith.constant 0 : i32
    return %c0_i32, %c0_i32_0 : i32, i32
  }
  func.func @transform_2(%arg0: i32) -> (i32, i32) {
    %c0_i32 = arith.constant 0 : i32
    %c0_i32_0 = arith.constant 0 : i32
    %c0_i32_1 = arith.constant 0 : i32
    return %c0_i32, %c0_i32_0 : i32, i32
  }
  func.func @transform_3(%arg0: i32) -> (i32, i32) {
    %c0_i32 = arith.constant 0 : i32
    %c0_i32_0 = arith.constant 0 : i32
    %c0_i32_1 = arith.constant 0 : i32
    return %c0_i32, %c0_i32_0 : i32, i32
  }
  func.func @transform_4(%arg0: i32) -> (i32, i32) {
    %c0_i32 = arith.constant 0 : i32
    %c0_i32_0 = arith.constant 0 : i32
    %c0_i32_1 = arith.constant 0 : i32
    return %c0_i32, %c0_i32_0 : i32, i32
  }
  func.func @transform_5(%arg0: i32) -> (i32, i32) {
    %c0_i32 = arith.constant 0 : i32
    %c0_i32_0 = arith.constant 0 : i32
    %c0_i32_1 = arith.constant 0 : i32
    return %c0_i32, %c0_i32_0 : i32, i32
  }
  func.func @transform_6(%arg0: i32) -> (i32, i32) {
    %c0_i32 = arith.constant 0 : i32
    %c0_i32_0 = arith.constant 0 : i32
    %c0_i32_1 = arith.constant 0 : i32
    return %c0_i32, %c0_i32_0 : i32, i32
  }
  func.func @transform_7(%arg0: i32) -> (i32, i32) {
    %c0_i32 = arith.constant 0 : i32
    %c0_i32_0 = arith.constant 0 : i32
    return %arg0, %c0_i32 : i32, i32
  }
}

</mosaic_0001>

<bundles_post_ra>
// kernel: _forward_jit.1
= control target key start
LH: loop header
LB: loop body
LE: loop exit
PB: predicated region body
PF: predicated region fallthrough
CT: control target
= control target key end

     0   :  { %12 = vsyncpa [#allocation3], 0  ;;  %s785_s0 = inlined_call_operand.hbm [shape: f32[8,32], index: 0, kind: input, shape index: {}]   ;;  %s786_s1 = inlined_call_operand.hbm [shape: bf16[32,128], index: 1, kind: input, shape index: {}]   ;;  %s787_s2 = inlined_call_operand.vmem [shape: f32[1,128], index: 2, kind: input, shape index: {}]   ;;  %s788_s3 = inlined_call_operand.hbm [shape: bf16[128,128], index: 3, kind: input, shape index: {}]   ;;  %s789_s4 = inlined_call_operand.vmem [shape: f32[1,128], index: 4, kind: input, shape index: {}]   ;;  %s790_s5 = inlined_call_operand.hbm [shape: bf16[128,128], index: 5, kind: input, shape index: {}]   ;;  %s791_s6 = inlined_call_operand.vmem [shape: f32[1,128], index: 6, kind: input, shape index: {}]   ;;  %s792_s7 = inlined_call_operand.hbm [shape: f32[8,16], index: 7, kind: output, shape index: {}]  }
   0x1   :  { %13 = vsyncpa [#allocation6], 0 }
   0x2   :  { %14 = vsyncpa [#allocation9], 0 }
   0x3   :  { %15 = vsyncpa [#allocation4], 0  ;;  %s634_s24 = smov [#allocation5]   ;;  %s516_s28 = scalar_lea.hbm %s786_s1, 256 }
   0x4   :  { %s31_s25 = sshll.u32 %s634_s24, 4  ;;  %p517_p0 = scmp.ne.s32.totalorder %s786_s1, %s516_s28  ;;  %s32_s25 = int_to_ptr.vmem [resolvable:$true] %s31_s25 }
   0x5   :  { %p520_p1 = scmp.lt.u32.totalorder %s516_s28, %s786_s1 }
   0x7   :  { %p522_p2 = pnand %p520_p1, %p517_p0 }
   0x9   :  { %525 = shalt.err (!%p522_p2)
}
   0xa   :  { %s526_s10 = scalar_lea.vmem %s32_s25, 256  ;;  %p531_p4 = scmp.lt.s32.totalorder %s32_s25, %s32_s25 }
   0xb   :  { %p527_p3 = scmp.ne.s32.totalorder %s32_s25, %s526_s10  ;;  %p532_p5 = scmp.lt.s32.totalorder %s526_s10, %s526_s10 }
   0xd   :  { %p533_p6 = por %p532_p5, %p531_p4 }
   0xf   :  { %p534_p7 = pnand %p533_p6, %p527_p3 }
  0x11   :  { %537 = shalt.err (!%p534_p7)
}
  0x12   :  { %s635_s11 = smov 64   ;;  %s636_s12 = smov 4  }
  0x13   :  { %37 = dma.hbm_to_vmem [thread:$0]  %s786_s1, 256, %s32_s25, [#allocation6], %s635_s11, %s635_s11, %s636_s12  }
  0x14   :  { %s637_s15 = smov [#allocation2]   ;;  %s638_s17 = smov [#allocation7]  }
  0x15   :  { %s22_s16 = sshll.u32 %s637_s15, 4  ;;  %s45_s18 = sshll.u32 %s638_s17, 4  ;;  %s23_s16 = int_to_ptr.vmem [resolvable:$true] %s22_s16  ;;  %s46_s18 = int_to_ptr.vmem [resolvable:$true] %s45_s18 }
  0x16   :  { %s538_s21 = scalar_lea.hbm %s785_s0, 128 }
  0x17   :  { %p539_p8 = scmp.ne.s32.totalorder %s785_s0, %s538_s21  ;;  %p542_p9 = scmp.lt.u32.totalorder %s538_s21, %s785_s0 }
  0x19   :  { %p544_p10 = pnand %p542_p9, %p539_p8 }
  0x1b   :  { %547 = shalt.err (!%p544_p10)
}
  0x1c   :  { %s548_s1 = scalar_lea.vmem %s23_s16, 128  ;;  %p553_p12 = scmp.lt.s32.totalorder %s23_s16, %s23_s16 }
  0x1d   :  { %p549_p11 = scmp.ne.s32.totalorder %s23_s16, %s548_s1  ;;  %p554_p13 = scmp.lt.s32.totalorder %s548_s1, %s548_s1 }
  0x1f   :  { %p555_p0 = por %p554_p13, %p553_p12 }
  0x21   :  { %p556_p1 = pnand %p555_p0, %p549_p11 }
  0x23   :  { %559 = shalt.err (!%p556_p1)
}
  0x24   :  { %25 = dma.hbm_to_vmem [thread:$0]  %s785_s0, 128, %s23_s16, [#allocation3]  }
  0x25   :  { %s560_s30 = scalar_lea.hbm %s788_s3, 1024 }
  0x26   :  { %p561_p2 = scmp.ne.s32.totalorder %s788_s3, %s560_s30  ;;  %p564_p3 = scmp.lt.u32.totalorder %s560_s30, %s788_s3 }
  0x28   :  { %p566_p4 = pnand %p564_p3, %p561_p2 }
  0x2a   :  { %569 = shalt.err (!%p566_p4)
}
  0x2b   :  { %s570_s14 = scalar_lea.vmem %s46_s18, 1024  ;;  %p575_p6 = scmp.lt.s32.totalorder %s46_s18, %s46_s18 }
  0x2c   :  { %p571_p5 = scmp.ne.s32.totalorder %s46_s18, %s570_s14  ;;  %p576_p7 = scmp.lt.s32.totalorder %s570_s14, %s570_s14 }
  0x2e   :  { %p577_p8 = por %p576_p7, %p575_p6 }
  0x30   :  { %p578_p9 = pnand %p577_p8, %p571_p5 }
  0x32   :  { %581 = shalt.err (!%p578_p9)
}
  0x33   :  { %51 = dma.hbm_to_vmem [thread:$0]  %s788_s3, 1024, %s46_s18, [#allocation6], %s635_s11, %s635_s11, %s636_s12  }
  0x34   :  { %s639_s16 = smov [#allocation8]   ;;  %s582_s21 = scalar_lea.hbm %s790_s5, 1024 }
  0x35   :  { %s59_s17 = sshll.u32 %s639_s16, 4  ;;  %p583_p10 = scmp.ne.s32.totalorder %s790_s5, %s582_s21  ;;  %s60_s17 = int_to_ptr.vmem [resolvable:$true] %s59_s17 }
  0x36   :  { %p586_p11 = scmp.lt.u32.totalorder %s582_s21, %s790_s5 }
  0x38   :  { %p588_p12 = pnand %p586_p11, %p583_p10 }
  0x3a   :  { %591 = shalt.err (!%p588_p12)
}
  0x3b   :  { %s592_s1 = scalar_lea.vmem %s60_s17, 1024  ;;  %p597_p0 = scmp.lt.s32.totalorder %s60_s17, %s60_s17 }
  0x3c   :  { %p593_p13 = scmp.ne.s32.totalorder %s60_s17, %s592_s1  ;;  %p598_p1 = scmp.lt.s32.totalorder %s592_s1, %s592_s1 }
  0x3e   :  { %p599_p2 = por %p598_p1, %p597_p0 }
  0x40   :  { %p600_p3 = pnand %p599_p2, %p593_p13 }
  0x42   :  { %603 = shalt.err (!%p600_p3)
}
  0x43   :  { %65 = dma.hbm_to_vmem [thread:$0]  %s790_s5, 1024, %s60_s17, [#allocation9], %s635_s11, %s635_s11, %s636_s12  }
  0x44   :  { %626 = dma.done.wait [#allocation3], 128  }
  0x45   :  { %627 = vsyncadd [#allocation3], 4294967168 }
  0x46   :  { %628 = dma.done.wait [#allocation6], 1280  }
  0x47   :  { %629 = vsyncadd [#allocation6], 4294966016 }
  0x48   :  { %630 = dma.done.wait [#allocation9], 1024  }
  0x49   :  { %631 = vsyncadd [#allocation9], 4294966272  ;;  %v640_v0 = vmov 0.0   ;;  %vm641_vm0 = vmmov 0   ;;  %v496_v1 = vld [vmem:[#allocation5] sm:$0xff]   ;;  %v497_v2 = vld [vmem:[#allocation5 + $0x8] sm:$0xff]  }
  0x4a   :  { %439 = vmatprep.subr.bf16.mxu0 %v640_v0  ;;  %443 = vmatprep.mubr.msk.bf16.mxu0 %vm641_vm0, %v640_v0  ;;  %v81_v3 = vld [vmem:[#allocation2] sm:$0xff]  ;;  %v498_v4 = vld [vmem:[#allocation7] sm:$0xff]   ;;  %vm106_vm1 = vcmask 261120   ;;  %v500_v7 = vld [vmem:[#allocation7 + $0x10] sm:$0xff]   ;;  %s642_s28 = smov [#allocation10]   ;;  %vm377_vm2 = vcmask 130048  }
  0x4b   :  { %447 = vmatprep.subr.bf16.mxu1 %v640_v0  ;;  %463 = vmatprep.mubr.msk.bf16.mxu1 %vm641_vm0, %v640_v0  ;;  %v87_v5 = vpack.c.bf16 %v81_v3, %v81_v3  ;;  %v499_v6 = vld [vmem:[#allocation7 + $0x8] sm:$0xff]   ;;  %v501_v8 = vld [vmem:[#allocation7 + $0x18] sm:$0xff]   ;;  %v502_v9 = vld [vmem:[#allocation7 + $0x20] sm:$0xff]  }
  0x4c   :  { %440 = vmatpush3.bf16.msra.mxu0 %v496_v1  ;;  %448 = vmatpush3.bf16.msra.mxu1 %v498_v4  ;;  %v503_v10 = vld [vmem:[#allocation7 + $0x28] sm:$0xff]   ;;  %v504_v11 = vld [vmem:[#allocation7 + $0x30] sm:$0xff]   ;;  %v505_v12 = vld [vmem:[#allocation7 + $0x38] sm:$0xff]  }
  0x4d   :  { %441 = vmatprep.subr.bf16.mxu0 %v640_v0  ;;  %449 = vmatprep.subr.bf16.mxu1 %v640_v0  ;;  %v506_v13 = vld [vmem:[#allocation8] sm:$0xff]   ;;  %v507_v14 = vld [vmem:[#allocation8 + $0x8] sm:$0xff]   ;;  %v508_v15 = vld [vmem:[#allocation8 + $0x10] sm:$0xff]  }
  0x4e   :  { %v509_v16 = vld [vmem:[#allocation8 + $0x18] sm:$0xff]   ;;  %v510_v17 = vld [vmem:[#allocation8 + $0x20] sm:$0xff]   ;;  %v511_v18 = vld [vmem:[#allocation8 + $0x28] sm:$0xff]  }
  0x4f   :  { %v396_v19 = vld [vmem:[%s787_s2] ss:$0 sm:$0xff]  ;;  %v512_v27 = vld [vmem:[#allocation8 + $0x30] sm:$0xff]   ;;  %v513_v28 = vld [vmem:[#allocation8 + $0x38] sm:$0xff]  }
  0x50   :  { %442 = vmatpush3.bf16.msra.mxu0 %v497_v2  ;;  %450 = vmatpush3.bf16.msra.mxu1 %v499_v6  ;;  %v400_v29 = vld [vmem:[%s789_s4] ss:$0 sm:$0xff]  ;;  %s385_s4 = sshll.u32 %s642_s28, 4  ;;  %s386_s4 = int_to_ptr.vmem [resolvable:$true] %s385_s4 }
  0x51   :  { %467 = vmatprep.subr.bf16.mxu0 %v640_v0  ;;  %451 = vmatprep.subr.bf16.mxu1 %v640_v0  ;;  %v409_v37 = vld [vmem:[%s791_s6] ss:$0 sm:$0xff]  ;;  %s604_s29 = scalar_lea.vmem %s386_s4, 128  ;;  %p609_p5 = scmp.lt.s32.totalorder %s386_s4, %s386_s4 }
  0x52   :  { %p605_p4 = scmp.ne.s32.totalorder %s386_s4, %s604_s29  ;;  %p610_p6 = scmp.lt.s32.totalorder %s604_s29, %s604_s29 }
  0x53   :  { %444 = vmatmul.mubr.msk.bf16.vlgmr.msra.gmra.mrb[0].mxu0 %vm106_vm1, %v87_v5 }
  0x54   :  { %483 = vmatprep.mubr.msk.bf16.mxu0 %vm641_vm0, %v640_v0  ;;  %452 = vmatpush3.bf16.msra.mxu1 %v500_v7  ;;  %p611_p7 = por %p610_p6, %p609_p5 }
  0x55   :  { %453 = vmatprep.subr.bf16.mxu1 %v640_v0  ;;  %468 = vmatpush3.bf16.msra.mxu0 %v506_v13 }
  0x56   :  { %469 = vmatprep.subr.bf16.mxu0 %v640_v0  ;;  %p612_p8 = pnand %p611_p7, %p605_p4 }
  0x58   :  { %454 = vmatpush3.bf16.msra.mxu1 %v501_v8 }
  0x59   :  { %455 = vmatprep.subr.bf16.mxu1 %v640_v0  ;;  %470 = vmatpush3.bf16.msra.mxu0 %v507_v14 }
  0x5a   :  { %471 = vmatprep.subr.bf16.mxu0 %v640_v0 }
  0x5c   :  { %456 = vmatpush3.bf16.msra.mxu1 %v502_v9 }
  0x5d   :  { %457 = vmatprep.subr.bf16.mxu1 %v640_v0  ;;  %472 = vmatpush3.bf16.msra.mxu0 %v508_v15 }
  0x5e   :  { %473 = vmatprep.subr.bf16.mxu0 %v640_v0 }
  0x60   :  { %458 = vmatpush3.bf16.msra.mxu1 %v503_v10 }
  0x61   :  { %459 = vmatprep.subr.bf16.mxu1 %v640_v0  ;;  %474 = vmatpush3.bf16.msra.mxu0 %v509_v16 }
  0x62   :  { %475 = vmatprep.subr.bf16.mxu0 %v640_v0 }
  0x64   :  { %460 = vmatpush3.bf16.msra.mxu1 %v504_v11 }
  0x65   :  { %461 = vmatprep.subr.bf16.mxu1 %v640_v0  ;;  %476 = vmatpush3.bf16.msra.mxu0 %v510_v17 }
  0x66   :  { %477 = vmatprep.subr.bf16.mxu0 %v640_v0 }
  0x68   :  { %462 = vmatpush3.bf16.msra.mxu1 %v505_v12 }
  0x69   :  { %478 = vmatpush3.bf16.msra.mxu0 %v511_v18 }
  0x6a   :  { %479 = vmatprep.subr.bf16.mxu0 %v640_v0 }
  0x6d   :  { %480 = vmatpush3.bf16.msra.mxu0 %v512_v27 }
  0x6e   :  { %481 = vmatprep.subr.bf16.mxu0 %v640_v0 }
  0x71   :  { %482 = vmatpush3.bf16.msra.mxu0 %v513_v28 }
 0x126   :  { %v144_v20 = vpop.f32.mrb[0].mxu0 }
 0x127   :  { %v145_v21 = vadd.f32 %v396_v19, %v144_v20  ;;  %v445_v22 = vpop.f32.mrb[1].mxu0 }
 0x128   :  { %v147_v23 = vpop.f32.mrb[2].mxu0 }
 0x129   :  { %v150_v24 = vmax.f32 %v145_v21, 0.0  ;;  %v446_v25 = vpop.f32.mrb[3].mxu0 }
 0x12b   :  { %v168_v26 = vpack.c.bf16 %v150_v24, %v150_v24 }
 0x12d   :  { %464 = vmatmul.mubr.bf16.vlgmr.msra.gmra.mrb[0].mxu1 %v168_v26 }
 0x200   :  { %v257_v30 = vpop.f32.mrb[0].mxu1 }
 0x201   :  { %v258_v31 = vadd.f32 %v400_v29, %v257_v30  ;;  %v465_v32 = vpop.f32.mrb[1].mxu1 }
 0x202   :  { %v260_v33 = vpop.f32.mrb[2].mxu1 }
 0x203   :  { %v263_v34 = vmax.f32 %v258_v31, 0.0  ;;  %v466_v35 = vpop.f32.mrb[3].mxu1 }
 0x205   :  { %v281_v36 = vpack.c.bf16 %v263_v34, %v263_v34 }
 0x207   :  { %484 = vmatmul.mubr.bf16.vlgmr.msra.gmra.mrb[4].mxu0 %v281_v36 }
 0x2da   :  { %v370_v38 = vpop.f32.mrb[4].mxu0 }
 0x2db   :  { %v371_v39 = vadd.f32 %v409_v37, %v370_v38  ;;  %v485_v40 = vpop.f32.mrb[5].mxu0 }
 0x2dc   :  { %v373_v41 = vpop.f32.mrb[6].mxu0 }
 0x2dd   :  { %514 = vtanh.f32 %v371_v39  ;;  %v486_v42 = vpop.f32.mrb[7].mxu0 }
 0x2e7   :  { %v515_v43 = vpop.eup %514 }
 0x2e8   :  { %378 = vst.msk [vmem:[#allocation10] sm:$0xff] %vm377_vm2, %v515_v43 }
 0x2e9   :  { %615 = shalt.err (!%p612_p8)
}
 0x2ea   :  { %s616_s8 = scalar_lea.hbm %s792_s7, 128 }
 0x2eb   :  { %p617_p9 = scmp.ne.s32.totalorder %s792_s7, %s616_s8  ;;  %p620_p10 = scmp.lt.u32.totalorder %s616_s8, %s792_s7 }
 0x2ed   :  { %p622_p11 = pnand %p620_p10, %p617_p9 }
 0x2ef   :  { %625 = shalt.err (!%p622_p11)
}
 0x2f0   :  { %388 = dma.vmem_to_hbm [thread:$0]  %s386_s4, 128, %s792_s7, [#allocation4]  }
 0x2f1   :  { %632 = dma.done.wait [#allocation4], 128  }
 0x2f2   :  { %633 = vsyncadd [#allocation4], 4294967168 }
 0x2f3   :  { %392 = vsyncpa [#allocation3], 1 }
 0x2f4   :  { %393 = vsyncpa [#allocation6], 1 }
 0x2f5   :  { %394 = vsyncpa [#allocation9], 1 }
 0x2f6   :  { %395 = vsyncpa [#allocation4], 1 }

// kernel: _forward_jit.1
= control target key start
LH: loop header
LB: loop body
LE: loop exit
PB: predicated region body
PF: predicated region fallthrough
CT: control target
= control target key end

     0   :  { %12 = vsyncpa [#allocation3], 0  ;;  %s785_s0 = inlined_call_operand.hbm [shape: f32[8,32], index: 0, kind: input, shape index: {}]   ;;  %s786_s1 = inlined_call_operand.hbm [shape: bf16[32,128], index: 1, kind: input, shape index: {}]   ;;  %s787_s2 = inlined_call_operand.vmem [shape: f32[1,128], index: 2, kind: input, shape index: {}]   ;;  %s788_s3 = inlined_call_operand.hbm [shape: bf16[128,128], index: 3, kind: input, shape index: {}]   ;;  %s789_s4 = inlined_call_operand.vmem [shape: f32[1,128], index: 4, kind: input, shape index: {}]   ;;  %s790_s5 = inlined_call_operand.hbm [shape: bf16[128,128], index: 5, kind: input, shape index: {}]   ;;  %s791_s6 = inlined_call_operand.vmem [shape: f32[1,128], index: 6, kind: input, shape index: {}]   ;;  %s792_s7 = inlined_call_operand.hbm [shape: f32[8,16], index: 7, kind: output, shape index: {}]  }
   0x1   :  { %13 = vsyncpa [#allocation6], 0 }
   0x2   :  { %14 = vsyncpa [#allocation9], 0 }
   0x3   :  { %15 = vsyncpa [#allocation4], 0  ;;  %s634_s24 = smov [#allocation5]   ;;  %s516_s28 = scalar_lea.hbm %s786_s1, 256 }
   0x4   :  { %s31_s25 = sshll.u32 %s634_s24, 4  ;;  %p517_p0 = scmp.ne.s32.totalorder %s786_s1, %s516_s28  ;;  %s32_s25 = int_to_ptr.vmem [resolvable:$true] %s31_s25 }
   0x5   :  { %p520_p1 = scmp.lt.u32.totalorder %s516_s28, %s786_s1 }
   0x7   :  { %p522_p2 = pnand %p520_p1, %p517_p0 }
   0x9   :  { %525 = shalt.err (!%p522_p2)
}
   0xa   :  { %s526_s10 = scalar_lea.vmem %s32_s25, 256  ;;  %p531_p4 = scmp.lt.s32.totalorder %s32_s25, %s32_s25 }
   0xb   :  { %p527_p3 = scmp.ne.s32.totalorder %s32_s25, %s526_s10  ;;  %p532_p5 = scmp.lt.s32.totalorder %s526_s10, %s526_s10 }
   0xd   :  { %p533_p6 = por %p532_p5, %p531_p4 }
   0xf   :  { %p534_p7 = pnand %p533_p6, %p527_p3 }
  0x11   :  { %537 = shalt.err (!%p534_p7)
}
  0x12   :  { %s635_s11 = smov 64   ;;  %s636_s12 = smov 4  }
  0x13   :  { %37 = dma.hbm_to_vmem [thread:$0]  %s786_s1, 256, %s32_s25, [#allocation6], %s635_s11, %s635_s11, %s636_s12  }
  0x14   :  { %s637_s15 = smov [#allocation2]   ;;  %s638_s17 = smov [#allocation7]  }
  0x15   :  { %s22_s16 = sshll.u32 %s637_s15, 4  ;;  %s45_s18 = sshll.u32 %s638_s17, 4  ;;  %s23_s16 = int_to_ptr.vmem [resolvable:$true] %s22_s16  ;;  %s46_s18 = int_to_ptr.vmem [resolvable:$true] %s45_s18 }
  0x16   :  { %s538_s21 = scalar_lea.hbm %s785_s0, 128 }
  0x17   :  { %p539_p8 = scmp.ne.s32.totalorder %s785_s0, %s538_s21  ;;  %p542_p9 = scmp.lt.u32.totalorder %s538_s21, %s785_s0 }
  0x19   :  { %p544_p10 = pnand %p542_p9, %p539_p8 }
  0x1b   :  { %547 = shalt.err (!%p544_p10)
}
  0x1c   :  { %s548_s1 = scalar_lea.vmem %s23_s16, 128  ;;  %p553_p12 = scmp.lt.s32.totalorder %s23_s16, %s23_s16 }
  0x1d   :  { %p549_p11 = scmp.ne.s32.totalorder %s23_s16, %s548_s1  ;;  %p554_p13 = scmp.lt.s32.totalorder %s548_s1, %s548_s1 }
  0x1f   :  { %p555_p0 = por %p554_p13, %p553_p12 }
  0x21   :  { %p556_p1 = pnand %p555_p0, %p549_p11 }
  0x23   :  { %559 = shalt.err (!%p556_p1)
}
  0x24   :  { %25 = dma.hbm_to_vmem [thread:$0]  %s785_s0, 128, %s23_s16, [#allocation3]  }
  0x25   :  { %s560_s30 = scalar_lea.hbm %s788_s3, 1024 }
  0x26   :  { %p561_p2 = scmp.ne.s32.totalorder %s788_s3, %s560_s30  ;;  %p564_p3 = scmp.lt.u32.totalorder %s560_s30, %s788_s3 }
  0x28   :  { %p566_p4 = pnand %p564_p3, %p561_p2 }
  0x2a   :  { %569 = shalt.err (!%p566_p4)
}
  0x2b   :  { %s570_s14 = scalar_lea.vmem %s46_s18, 1024  ;;  %p575_p6 = scmp.lt.s32.totalorder %s46_s18, %s46_s18 }
  0x2c   :  { %p571_p5 = scmp.ne.s32.totalorder %s46_s18, %s570_s14  ;;  %p576_p7 = scmp.lt.s32.totalorder %s570_s14, %s570_s14 }
  0x2e   :  { %p577_p8 = por %p576_p7, %p575_p6 }
  0x30   :  { %p578_p9 = pnand %p577_p8, %p571_p5 }
  0x32   :  { %581 = shalt.err (!%p578_p9)
}
  0x33   :  { %51 = dma.hbm_to_vmem [thread:$0]  %s788_s3, 1024, %s46_s18, [#allocation6], %s635_s11, %s635_s11, %s636_s12  }
  0x34   :  { %s639_s16 = smov [#allocation8]   ;;  %s582_s21 = scalar_lea.hbm %s790_s5, 1024 }
  0x35   :  { %s59_s17 = sshll.u32 %s639_s16, 4  ;;  %p583_p10 = scmp.ne.s32.totalorder %s790_s5, %s582_s21  ;;  %s60_s17 = int_to_ptr.vmem [resolvable:$true] %s59_s17 }
  0x36   :  { %p586_p11 = scmp.lt.u32.totalorder %s582_s21, %s790_s5 }
  0x38   :  { %p588_p12 = pnand %p586_p11, %p583_p10 }
  0x3a   :  { %591 = shalt.err (!%p588_p12)
}
  0x3b   :  { %s592_s1 = scalar_lea.vmem %s60_s17, 1024  ;;  %p597_p0 = scmp.lt.s32.totalorder %s60_s17, %s60_s17 }
  0x3c   :  { %p593_p13 = scmp.ne.s32.totalorder %s60_s17, %s592_s1  ;;  %p598_p1 = scmp.lt.s32.totalorder %s592_s1, %s592_s1 }
  0x3e   :  { %p599_p2 = por %p598_p1, %p597_p0 }
  0x40   :  { %p600_p3 = pnand %p599_p2, %p593_p13 }
  0x42   :  { %603 = shalt.err (!%p600_p3)
}
  0x43   :  { %65 = dma.hbm_to_vmem [thread:$0]  %s790_s5, 1024, %s60_s17, [#allocation9], %s635_s11, %s635_s11, %s636_s12  }
  0x44   :  { %626 = dma.done.wait [#allocation3], 128  }
  0x45   :  { %627 = vsyncadd [#allocation3], 4294967168 }
  0x46   :  { %628 = dma.done.wait [#allocation6], 1280  }
  0x47   :  { %629 = vsyncadd [#allocation6], 4294966016 }
  0x48   :  { %630 = dma.done.wait [#allocation9], 1024  }
  0x49   :  { %631 = vsyncadd [#allocation9], 4294966272  ;;  %v640_v0 = vmov 0.0   ;;  %vm641_vm0 = vmmov 0   ;;  %v496_v1 = vld [vmem:[#allocation5] sm:$0xff]   ;;  %v497_v2 = vld [vmem:[#allocation5 + $0x8] sm:$0xff]  }
  0x4a   :  { %439 = vmatprep.subr.bf16.mxu0 %v640_v0  ;;  %443 = vmatprep.mubr.msk.bf16.mxu0 %vm641_vm0, %v640_v0  ;;  %v81_v3 = vld [vmem:[#allocation2] sm:$0xff]  ;;  %v498_v4 = vld [vmem:[#allocation7] sm:$0xff]   ;;  %vm106_vm1 = vcmask 261120   ;;  %v500_v7 = vld [vmem:[#allocation7 + $0x10] sm:$0xff]   ;;  %s642_s28 = smov [#allocation10]   ;;  %vm377_vm2 = vcmask 130048  }
  0x4b   :  { %447 = vmatprep.subr.bf16.mxu1 %v640_v0  ;;  %463 = vmatprep.mubr.msk.bf16.mxu1 %vm641_vm0, %v640_v0  ;;  %v87_v5 = vpack.c.bf16 %v81_v3, %v81_v3  ;;  %v499_v6 = vld [vmem:[#allocation7 + $0x8] sm:$0xff]   ;;  %v501_v8 = vld [vmem:[#allocation7 + $0x18] sm:$0xff]   ;;  %v502_v9 = vld [vmem:[#allocation7 + $0x20] sm:$0xff]  }
  0x4c   :  { %440 = vmatpush3.bf16.msra.mxu0 %v496_v1  ;;  %448 = vmatpush3.bf16.msra.mxu1 %v498_v4  ;;  %v503_v10 = vld [vmem:[#allocation7 + $0x28] sm:$0xff]   ;;  %v504_v11 = vld [vmem:[#allocation7 + $0x30] sm:$0xff]   ;;  %v505_v12 = vld [vmem:[#allocation7 + $0x38] sm:$0xff]  }
  0x4d   :  { %441 = vmatprep.subr.bf16.mxu0 %v640_v0  ;;  %449 = vmatprep.subr.bf16.mxu1 %v640_v0  ;;  %v506_v13 = vld [vmem:[#allocation8] sm:$0xff]   ;;  %v507_v14 = vld [vmem:[#allocation8 + $0x8] sm:$0xff]   ;;  %v508_v15 = vld [vmem:[#allocation8 + $0x10] sm:$0xff]  }
  0x4e   :  { %v509_v16 = vld [vmem:[#allocation8 + $0x18] sm:$0xff]   ;;  %v510_v17 = vld [vmem:[#allocation8 + $0x20] sm:$0xff]   ;;  %v511_v18 = vld [vmem:[#allocation8 + $0x28] sm:$0xff]  }
  0x4f   :  { %v396_v19 = vld [vmem:[%s787_s2] ss:$0 sm:$0xff]  ;;  %v512_v27 = vld [vmem:[#allocation8 + $0x30] sm:$0xff]   ;;  %v513_v28 = vld [vmem:[#allocation8 + $0x38] sm:$0xff]  }
  0x50   :  { %442 = vmatpush3.bf16.msra.mxu0 %v497_v2  ;;  %450 = vmatpush3.bf16.msra.mxu1 %v499_v6  ;;  %v400_v29 = vld [vmem:[%s789_s4] ss:$0 sm:$0xff]  ;;  %s385_s4 = sshll.u32 %s642_s28, 4  ;;  %s386_s4 = int_to_ptr.vmem [resolvable:$true] %s385_s4 }
  0x51   :  { %467 = vmatprep.subr.bf16.mxu0 %v640_v0  ;;  %451 = vmatprep.subr.bf16.mxu1 %v640_v0  ;;  %v409_v37 = vld [vmem:[%s791_s6] ss:$0 sm:$0xff]  ;;  %s604_s29 = scalar_lea.vmem %s386_s4, 128  ;;  %p609_p5 = scmp.lt.s32.totalorder %s386_s4, %s386_s4 }
  0x52   :  { %p605_p4 = scmp.ne.s32.totalorder %s386_s4, %s604_s29  ;;  %p610_p6 = scmp.lt.s32.totalorder %s604_s29, %s604_s29 }
  0x53   :  { %444 = vmatmul.mubr.msk.bf16.vlgmr.msra.gmra.mrb[0].mxu0 %vm106_vm1, %v87_v5 }
  0x54   :  { %483 = vmatprep.mubr.msk.bf16.mxu0 %vm641_vm0, %v640_v0  ;;  %452 = vmatpush3.bf16.msra.mxu1 %v500_v7  ;;  %p611_p7 = por %p610_p6, %p609_p5 }
  0x55   :  { %453 = vmatprep.subr.bf16.mxu1 %v640_v0  ;;  %468 = vmatpush3.bf16.msra.mxu0 %v506_v13 }
  0x56   :  { %469 = vmatprep.subr.bf16.mxu0 %v640_v0  ;;  %p612_p8 = pnand %p611_p7, %p605_p4 }
  0x58   :  { %454 = vmatpush3.bf16.msra.mxu1 %v501_v8 }
  0x59   :  { %455 = vmatprep.subr.bf16.mxu1 %v640_v0  ;;  %470 = vmatpush3.bf16.msra.mxu0 %v507_v14 }
  0x5a   :  { %471 = vmatprep.subr.bf16.mxu0 %v640_v0 }
  0x5c   :  { %456 = vmatpush3.bf16.msra.mxu1 %v502_v9 }
  0x5d   :  { %457 = vmatprep.subr.bf16.mxu1 %v640_v0  ;;  %472 = vmatpush3.bf16.msra.mxu0 %v508_v15 }
  0x5e   :  { %473 = vmatprep.subr.bf16.mxu0 %v640_v0 }
  0x60   :  { %458 = vmatpush3.bf16.msra.mxu1 %v503_v10 }
  0x61   :  { %459 = vmatprep.subr.bf16.mxu1 %v640_v0  ;;  %474 = vmatpush3.bf16.msra.mxu0 %v509_v16 }
  0x62   :  { %475 = vmatprep.subr.bf16.mxu0 %v640_v0 }
  0x64   :  { %460 = vmatpush3.bf16.msra.mxu1 %v504_v11 }
  0x65   :  { %461 = vmatprep.subr.bf16.mxu1 %v640_v0  ;;  %476 = vmatpush3.bf16.msra.mxu0 %v510_v17 }
  0x66   :  { %477 = vmatprep.subr.bf16.mxu0 %v640_v0 }
  0x68   :  { %462 = vmatpush3.bf16.msra.mxu1 %v505_v12 }
  0x69   :  { %478 = vmatpush3.bf16.msra.mxu0 %v511_v18 }
  0x6a   :  { %479 = vmatprep.subr.bf16.mxu0 %v640_v0 }
  0x6d   :  { %480 = vmatpush3.bf16.msra.mxu0 %v512_v27 }
  0x6e   :  { %481 = vmatprep.subr.bf16.mxu0 %v640_v0 }
  0x71   :  { %482 = vmatpush3.bf16.msra.mxu0 %v513_v28 }
 0x126   :  { %v144_v20 = vpop.f32.mrb[0].mxu0 }
 0x127   :  { %v145_v21 = vadd.f32 %v396_v19, %v144_v20  ;;  %v445_v22 = vpop.f32.mrb[1].mxu0 }
 0x128   :  { %v147_v23 = vpop.f32.mrb[2].mxu0 }
 0x129   :  { %v150_v24 = vmax.f32 %v145_v21, 0.0  ;;  %v446_v25 = vpop.f32.mrb[3].mxu0 }
 0x12b   :  { %v168_v26 = vpack.c.bf16 %v150_v24, %v150_v24 }
 0x12d   :  { %464 = vmatmul.mubr.bf16.vlgmr.msra.gmra.mrb[0].mxu1 %v168_v26 }
 0x200   :  { %v257_v30 = vpop.f32.mrb[0].mxu1 }
 0x201   :  { %v258_v31 = vadd.f32 %v400_v29, %v257_v30  ;;  %v465_v32 = vpop.f32.mrb[1].mxu1 }
 0x202   :  { %v260_v33 = vpop.f32.mrb[2].mxu1 }
 0x203   :  { %v263_v34 = vmax.f32 %v258_v31, 0.0  ;;  %v466_v35 = vpop.f32.mrb[3].mxu1 }
 0x205   :  { %v281_v36 = vpack.c.bf16 %v263_v34, %v263_v34 }
 0x207   :  { %484 = vmatmul.mubr.bf16.vlgmr.msra.gmra.mrb[4].mxu0 %v281_v36 }
 0x2da   :  { %v370_v38 = vpop.f32.mrb[4].mxu0 }
 0x2db   :  { %v371_v39 = vadd.f32 %v409_v37, %v370_v38  ;;  %v485_v40 = vpop.f32.mrb[5].mxu0 }
 0x2dc   :  { %v373_v41 = vpop.f32.mrb[6].mxu0 }
 0x2dd   :  { %514 = vtanh.f32 %v371_v39  ;;  %v486_v42 = vpop.f32.mrb[7].mxu0 }
 0x2e7   :  { %v515_v43 = vpop.eup %514 }
 0x2e8   :  { %378 = vst.msk [vmem:[#allocation10] sm:$0xff] %vm377_vm2, %v515_v43 }
 0x2e9   :  { %615 = shalt.err (!%p612_p8)
}
 0x2ea   :  { %s616_s8 = scalar_lea.hbm %s792_s7, 128 }
 0x2eb   :  { %p617_p9 = scmp.ne.s32.totalorder %s792_s7, %s616_s8  ;;  %p620_p10 = scmp.lt.u32.totalorder %s616_s8, %s792_s7 }
 0x2ed   :  { %p622_p11 = pnand %p620_p10, %p617_p9 }
 0x2ef   :  { %625 = shalt.err (!%p622_p11)
}
 0x2f0   :  { %388 = dma.vmem_to_hbm [thread:$0]  %s386_s4, 128, %s792_s7, [#allocation4]  }
 0x2f1   :  { %632 = dma.done.wait [#allocation4], 128  }
 0x2f2   :  { %633 = vsyncadd [#allocation4], 4294967168 }
 0x2f3   :  { %392 = vsyncpa [#allocation3], 1 }
 0x2f4   :  { %393 = vsyncpa [#allocation6], 1 }
 0x2f5   :  { %394 = vsyncpa [#allocation9], 1 }
 0x2f6   :  { %395 = vsyncpa [#allocation4], 1 }

</bundles_post_ra>
